<compile_context>
chip_gen: v7x
topology: tpu7x:2x2x1
jax: 0.10.0
libtpu: 0.0.40
codegen_flags: <defaults>
</compile_context>

<pallas_src>
import jax
import jax.numpy as jnp
from jax.experimental import pallas as pl
from jax.experimental.pallas import tpu as pltpu


def _round_up(x, m):
    return ((x + m - 1) // m) * m


def _pick_tile(dim, want, align):
    """Largest multiple of `align` that divides `dim` and is <= want (dim % align == 0)."""
    want = max(min(want, dim), align)
    t = (want // align) * align
    while dim % t != 0:
        t -= align
    return t


def _vmem_budget_bytes():
    """Physical-VMEM-aware budget with headroom for Mosaic internal scratch."""
    cap = 64 << 20  # conservative fallback (v7x has 64 MiB per TensorCore)
    try:
        info = pltpu.get_tpu_info()
        cap = int(getattr(info, "vmem_capacity_bytes", cap)) or cap
    except Exception:
        pass
    return max(min(int(cap * 0.85), cap - (8 << 20)), 16 << 20)


def _gelu_tanh(x):
    # gelu_pytorch_tanh: 0.5*x*(1 + tanh(sqrt(2/pi)*(x + 0.044715*x^3)))
    c = jnp.asarray(0.7978845608028654, x.dtype)
    return 0.5 * x * (1.0 + jnp.tanh(c * (x + 0.044715 * x * x * x)))


def gemma2_mlp_kernel(x_ref, gu_wt_ref, down_wt_ref, o_ref, acc_ref):
    """Grid (i over token tiles, j over intermediate tiles). acc_ref: (tm, Hp) f32."""
    j = pl.program_id(1)

    @pl.when(j == 0)
    def _():
        acc_ref[...] = jnp.zeros_like(acc_ref)

    x = x_ref[...]                                                          # (tm, Hp)
    # Single fused MXU push for [gate | up]: (tm, Hp) @ (Hp, 2*ti) -> (tm, 2*ti).
    gu = jnp.dot(x, gu_wt_ref[...], preferred_element_type=jnp.float32)
    ti = gu.shape[-1] // 2                                                  # lane-multiple split: free
    h = (_gelu_tanh(gu[:, :ti]) * gu[:, ti:]).astype(down_wt_ref.dtype)    # (tm, ti)
    acc_ref[...] += jnp.dot(h, down_wt_ref[...], preferred_element_type=jnp.float32)

    @pl.when(j == pl.num_programs(1) - 1)
    def _():
        o_ref[...] = acc_ref[...].astype(o_ref.dtype)


def prepare_gemma2_mlp_weights(gate_w, up_w, down_w, *, ti=None,
                               weight_dtype=jnp.bfloat16, lane=128):
    """One-time (init-path) weight prep.

    * transpose to matmul layout and zero-pad H / I to lane (128) multiples,
    * cast to the serving dtype (bf16 default -> halves the weight stream),
    * fuse gate & up into a single tensor laid out as [g_blk0 | u_blk0 | g_blk1 | ...]
      with block width `ti_eff`, so each grid step streams one (Hp, 2*ti) tile.

    PyTorch nn.Linear layout in: gate_w/up_w: [I, H], down_w: [H, I].
    Returns (gateup_wt [Hp, 2*Ip], down_wt [Ip, Hp], ti_eff).
    """
    I, H = gate_w.shape
    assert up_w.shape == (I, H) and down_w.shape == (H, I)
    Hp = _round_up(H, lane)
    Ip = _round_up(I, lane)

    if ti is None:
        # Largest intermediate tile (<= 1024) whose double-buffered weight tiles
        # (fused gate|up + down = 6*ti*Hp*wbytes) stay under ~45% of the VMEM budget.
        wbytes = jnp.dtype(weight_dtype).itemsize
        budget = int(_vmem_budget_bytes() * 0.45)
        ti = 1024
        while ti > 128 and 6 * ti * Hp * wbytes > budget:
            ti -= 128
    ti_eff = _pick_tile(Ip, ti, lane)

    gate_wt = jnp.pad(gate_w.T, ((0, Hp - H), (0, Ip - I))).astype(weight_dtype)
    up_wt = jnp.pad(up_w.T, ((0, Hp - H), (0, Ip - I))).astype(weight_dtype)
    down_wt = jnp.pad(down_w.T, ((0, Ip - I), (0, Hp - H))).astype(weight_dtype)

    nblk = Ip // ti_eff
    gateup_wt = jnp.concatenate(
        [gate_wt.reshape(Hp, nblk, ti_eff), up_wt.reshape(Hp, nblk, ti_eff)], axis=-1
    ).reshape(Hp, 2 * Ip)
    return gateup_wt, down_wt, ti_eff


def gemma2_mlp(x, gateup_wt, down_wt, ti_eff, *, tm=512):
    """x: [B, S, H]; weights pre-prepared via prepare_gemma2_mlp_weights (same ti_eff).

    For serving, pass bf16 activations so the fused matmul runs fully in bf16 on the MXU.
    """
    B, S, H = x.shape
    Ip, Hp = down_wt.shape
    assert gateup_wt.shape == (Hp, 2 * Ip)
    assert Ip % ti_eff == 0
    M = B * S

    xbytes = jnp.dtype(x.dtype).itemsize
    wbytes = jnp.dtype(gateup_wt.dtype).itemsize
    budget = _vmem_budget_bytes()

    # Token tile: multiple of 8 sublanes, no bigger than (padded) M.
    tm_eff = min(_round_up(tm, 8), _round_up(M, 8))
    # Prefer a tm that divides M exactly (avoids an extra padded HBM copy of x),
    # as long as we don't lose more than half the tile size.
    if M % 8 == 0 and M % tm_eff != 0:
        t = tm_eff
        while t > 8 and M % t != 0:
            t -= 8
        if M % t == 0 and 2 * t >= tm_eff:
            tm_eff = t
    # v7x megacore: if a single M tile would cover all tokens but there is enough
    # work for two, split so both TensorCores get an M tile.
    if M <= tm_eff and M >= 256:
        tm_eff = _round_up((M + 1) // 2, 8)
    # TODO(synk): tiny-M decode path on v7x — split the I reduction across the two
    # TensorCores (per-core partial f32 accumulators + final add) instead.

    def vmem_needed(tm_v):
        return (
            2 * tm_v * Hp * xbytes              # x tile (double buffered)
            + 2 * Hp * (2 * ti_eff) * wbytes    # fused [gate|up] weight tile
            + 2 * ti_eff * Hp * wbytes          # down weight tile
            + 2 * tm_v * Hp * xbytes            # output tile
            + tm_v * Hp * 4                     # f32 accumulator
        )

    # Auto-shrink tm (ti is baked into the fused weight layout) to fit VMEM.
    while vmem_needed(tm_eff) > budget and tm_eff > 128:
        tm_eff = max(_round_up(tm_eff // 2, 8), 128)
    Mp = _round_up(M, tm_eff)

    x2d = x.reshape(M, H)
    if Mp != M or Hp != H:
        x2d = jnp.pad(x2d, ((0, Mp - M), (0, Hp - H)))

    vmem_limit = min(budget, max(int(vmem_needed(tm_eff) * 1.4) + (2 << 20), 16 << 20))

    out2d = pl.pallas_call(
        gemma2_mlp_kernel,
        out_shape=jax.ShapeDtypeStruct((Mp, Hp), x.dtype),
        grid_spec=pltpu.PrefetchScalarGridSpec(
            num_scalar_prefetch=0,
            grid=(Mp // tm_eff, Ip // ti_eff),
            in_specs=[
                pl.BlockSpec((tm_eff, Hp), lambda i, j: (i, 0)),       # x tile (reused over j)
                pl.BlockSpec((Hp, 2 * ti_eff), lambda i, j: (0, j)),   # fused [gate|up] tile
                pl.BlockSpec((ti_eff, Hp), lambda i, j: (j, 0)),       # down tile
            ],
            out_specs=pl.BlockSpec((tm_eff, Hp), lambda i, j: (i, 0)),
            scratch_shapes=[pltpu.VMEM((tm_eff, Hp), jnp.float32)],
        ),
        compiler_params=pltpu.CompilerParams(
            dimension_semantics=("parallel", "arbitrary"),
            vmem_limit_bytes=vmem_limit,
        ),
    )(x2d, gateup_wt, down_wt)

    return out2d[:M, :H].reshape(B, S, H)


def gemma2_mlp_ref(x, gate_w, up_w, down_w):
    """Plain-JAX reference mirroring the PyTorch forward (gelu_pytorch_tanh)."""
    gate = jnp.einsum("bsh,ih->bsi", x, gate_w)
    up = jnp.einsum("bsh,ih->bsi", x, up_w)
    return jnp.einsum("bsi,hi->bsh", _gelu_tanh(gate) * up, down_w)


if __name__ == "__main__":
    # Small config consistent with the module: hidden_size=32, intermediate_size=64
    B, S, H, I = 2, 8, 32, 64
    key = jax.random.PRNGKey(0)
    kx, kg, ku, kd = jax.random.split(key, 4)

    x = jax.random.normal(kx, (B, S, H), dtype=jnp.float32)
    # PyTorch nn.Linear weight layout: [out_features, in_features]
    gate_w = jax.random.normal(kg, (I, H), dtype=jnp.float32) * 0.05
    up_w = jax.random.normal(ku, (I, H), dtype=jnp.float32) * 0.05
    down_w = jax.random.normal(kd, (H, I), dtype=jnp.float32) * 0.05

    ref = gemma2_mlp_ref(x, gate_w, up_w, down_w)

    # 1) Exactness check with f32 weights (matches the f32 reference tightly).
    gu_f32, dn_f32, ti_f32 = prepare_gemma2_mlp_weights(
        gate_w, up_w, down_w, weight_dtype=jnp.float32)
    out_f32 = jax.block_until_ready(gemma2_mlp(x, gu_f32, dn_f32, ti_f32))
    if not jnp.allclose(out_f32, ref, atol=1e-4, rtol=1e-4):
        raise AssertionError("Pallas Gemma2MLP (f32 weights) mismatch vs reference")

    # 2) Serving path: bf16 fused weights (default); bf16 rounding -> looser tolerance.
    gu_bf, dn_bf, ti_bf = prepare_gemma2_mlp_weights(gate_w, up_w, down_w)
    out_bf = jax.block_until_ready(gemma2_mlp(x, gu_bf, dn_bf, ti_bf))
    if not jnp.allclose(out_bf, ref, atol=2e-2, rtol=2e-2):
        raise AssertionError("Pallas Gemma2MLP (bf16 weights) mismatch vs reference")

    print("KERNEL_OK")
</pallas_src>

<mosaic_0001>
module attributes {stable_mosaic.version = 11 : i64} {
  func.func @gemma2_mlp_kernel(%arg0: i32, %arg1: i32, %arg2: memref<16x128xf32, #tpu.memory_space<vmem>>, %arg3: memref<128x256xf32, #tpu.memory_space<vmem>>, %arg4: memref<128x128xf32, #tpu.memory_space<vmem>>, %arg5: memref<16x128xf32, #tpu.memory_space<vmem>>, %arg6: memref<16x128xf32, #tpu.memory_space<vmem>>) attributes {dimension_semantics = [#tpu.dimension_semantics<parallel>, #tpu.dimension_semantics<arbitrary>], iteration_bounds = array<i64: 1, 1>, scalar_prefetch = 0 : i64, scratch_operands = 1 : i64, tpu.core_type = #tpu.core_type<tc>, window_params = [{transform_indices = @transform_0, window_bounds = array<i64: 16, 128>}, {transform_indices = @transform_1, window_bounds = array<i64: 128, 256>}, {transform_indices = @transform_2, window_bounds = array<i64: 128, 128>}, {transform_indices = @transform_3, window_bounds = array<i64: 16, 128>}]} {
    %c0_i32 = arith.constant 0 : i32
    %0 = arith.cmpi eq, %arg1, %c0_i32 : i32
    %1 = arith.extui %0 : i1 to i32
    %c0_i32_0 = arith.constant 0 : i32
    %2 = arith.cmpi ne, %1, %c0_i32_0 : i32
    scf.if %2 {
      %cst_17 = arith.constant 0.000000e+00 : f32
      %30 = vector.broadcast %cst_17 : f32 to vector<16x128xf32>
      %c0_18 = arith.constant 0 : index
      %c0_19 = arith.constant 0 : index
      %31 = vector.load %arg6[%c0_18, %c0_19] : memref<16x128xf32, #tpu.memory_space<vmem>>, vector<16x128xf32>
      tpu.vector_store %arg6[%c0_18, %c0_19], %30 {strides = array<i32>} : memref<16x128xf32, #tpu.memory_space<vmem>>, vector<16x128xf32>,
    } else {
    }
    %c0 = arith.constant 0 : index
    %c0_1 = arith.constant 0 : index
    %3 = vector.load %arg2[%c0, %c0_1] : memref<16x128xf32, #tpu.memory_space<vmem>>, vector<16x128xf32>
    %c0_2 = arith.constant 0 : index
    %c0_3 = arith.constant 0 : index
    %4 = vector.load %arg3[%c0_2, %c0_3] : memref<128x256xf32, #tpu.memory_space<vmem>>, vector<128x256xf32>
    %cst = arith.constant dense<0.000000e+00> : vector<16x256xf32>
    %5 = tpu.matmul %3, %4, %cst {dimension_numbers = #tpu.dot_dimension_numbers<[1], [0], [0], [1], [0, 0, 1, 1], [], []>} : vector<16x128xf32>, vector<128x256xf32>, vector<16x256xf32> -> vector<16x256xf32>
    %6 = vector.extract_strided_slice %5 {offsets = [0, 0], sizes = [16, 128], strides = [1, 1]} : vector<16x256xf32> to vector<16x128xf32>
    %cst_4 = arith.constant 5.000000e-01 : f32
    %7 = vector.broadcast %cst_4 : f32 to vector<16x128xf32>
    %8 = arith.mulf %7, %6 : vector<16x128xf32>
    %cst_5 = arith.constant 4.471500e-02 : f32
    %9 = vector.broadcast %cst_5 : f32 to vector<16x128xf32>
    %10 = arith.mulf %9, %6 : vector<16x128xf32>
    %11 = arith.mulf %10, %6 : vector<16x128xf32>
    %12 = arith.mulf %11, %6 : vector<16x128xf32>
    %13 = arith.addf %6, %12 : vector<16x128xf32>
    %cst_6 = arith.constant 0.797884583 : f32
    %14 = vector.broadcast %cst_6 : f32 to vector<16x128xf32>
    %15 = arith.mulf %14, %13 : vector<16x128xf32>
    %16 = math.tanh %15 : vector<16x128xf32>
    %cst_7 = arith.constant 1.000000e+00 : f32
    %17 = vector.broadcast %cst_7 : f32 to vector<16x128xf32>
    %18 = arith.addf %17, %16 : vector<16x128xf32>
    %19 = arith.mulf %8, %18 : vector<16x128xf32>
    %20 = vector.extract_strided_slice %5 {offsets = [0, 128], sizes = [16, 128], strides = [1, 1]} : vector<16x256xf32> to vector<16x128xf32>
    %21 = arith.mulf %19, %20 : vector<16x128xf32>
    %c0_8 = arith.constant 0 : index
    %c0_9 = arith.constant 0 : index
    %22 = vector.load %arg6[%c0_8, %c0_9] : memref<16x128xf32, #tpu.memory_space<vmem>>, vector<16x128xf32>
    %c0_10 = arith.constant 0 : index
    %c0_11 = arith.constant 0 : index
    %23 = vector.load %arg4[%c0_10, %c0_11] : memref<128x128xf32, #tpu.memory_space<vmem>>, vector<128x128xf32>
    %cst_12 = arith.constant dense<0.000000e+00> : vector<16x128xf32>
    %24 = tpu.matmul %21, %23, %cst_12 {dimension_numbers = #tpu.dot_dimension_numbers<[1], [0], [0], [1], [0, 0, 1, 1], [], []>} : vector<16x128xf32>, vector<128x128xf32>, vector<16x128xf32> -> vector<16x128xf32>
    %25 = arith.addf %22, %24 : vector<16x128xf32>
    %c0_13 = arith.constant 0 : index
    %c0_14 = arith.constant 0 : index
    %26 = vector.load %arg6[%c0_13, %c0_14] : memref<16x128xf32, #tpu.memory_space<vmem>>, vector<16x128xf32>
    tpu.vector_store %arg6[%c0_13, %c0_14], %25 {strides = array<i32>} : memref<16x128xf32, #tpu.memory_space<vmem>>, vector<16x128xf32>,
    %c0_i32_15 = arith.constant 0 : i32
    %27 = arith.cmpi eq, %arg1, %c0_i32_15 : i32
    %28 = arith.extui %27 : i1 to i32
    %c0_i32_16 = arith.constant 0 : i32
    %29 = arith.cmpi ne, %28, %c0_i32_16 : i32
    scf.if %29 {
      %c0_17 = arith.constant 0 : index
      %c0_18 = arith.constant 0 : index
      %30 = vector.load %arg6[%c0_17, %c0_18] : memref<16x128xf32, #tpu.memory_space<vmem>>, vector<16x128xf32>
      %c0_19 = arith.constant 0 : index
      %c0_20 = arith.constant 0 : index
      %31 = vector.load %arg5[%c0_19, %c0_20] : memref<16x128xf32, #tpu.memory_space<vmem>>, vector<16x128xf32>
      tpu.vector_store %arg5[%c0_19, %c0_20], %30 {strides = array<i32>} : memref<16x128xf32, #tpu.memory_space<vmem>>, vector<16x128xf32>,
    } else {
    }
    return
  }
  func.func @transform_0(%arg0: i32, %arg1: i32) -> (i32, i32) {
    %c0_i32 = arith.constant 0 : i32
    %c0_i32_0 = arith.constant 0 : i32
    return %arg0, %c0_i32 : i32, i32
  }
  func.func @transform_1(%arg0: i32, %arg1: i32) -> (i32, i32) {
    %c0_i32 = arith.constant 0 : i32
    %c0_i32_0 = arith.constant 0 : i32
    return %c0_i32, %arg1 : i32, i32
  }
  func.func @transform_2(%arg0: i32, %arg1: i32) -> (i32, i32) {
    %c0_i32 = arith.constant 0 : i32
    %c0_i32_0 = arith.constant 0 : i32
    return %arg1, %c0_i32 : i32, i32
  }
  func.func @transform_3(%arg0: i32, %arg1: i32) -> (i32, i32) {
    %c0_i32 = arith.constant 0 : i32
    %c0_i32_0 = arith.constant 0 : i32
    return %arg0, %c0_i32 : i32, i32
  }
}

</mosaic_0001>

<bundles_post_ra>
// kernel: tpu_custom_call.1
= control target key start
LH: loop header
LB: loop body
LE: loop exit
PB: predicated region body
PF: predicated region fallthrough
CT: control target
= control target key end

     0   :  { %8 = vsyncpa [#allocation4], 0  ;;  %s627_s0 = inlined_call_operand.hbm [shape: f32[16,128], index: 0, kind: input, shape index: {}]   ;;  %s628_s1 = inlined_call_operand.hbm [shape: f32[128,256], index: 1, kind: input, shape index: {}]   ;;  %s629_s2 = inlined_call_operand.hbm [shape: f32[128,128], index: 2, kind: input, shape index: {}]   ;;  %s630_s3 = inlined_call_operand.hbm [shape: f32[16,128], index: 3, kind: output, shape index: {}]  }
   0x1   :  { %9 = vsyncpa [#allocation7], 0 }
   0x2   :  { %10 = vsyncpa [#allocation5], 0  ;;  %s539_s12 = smov [#allocation6]   ;;  %s445_s16 = scalar_lea.hbm %s628_s1, 4096 }
   0x3   :  { %s28_s13 = sshll.u32 %s539_s12, 4  ;;  %p446_p0 = scmp.ne.s32.totalorder %s628_s1, %s445_s16  ;;  %s29_s13 = int_to_ptr.vmem [resolvable:$true] %s28_s13 }
   0x4   :  { %p449_p1 = scmp.lt.u32.totalorder %s445_s16, %s628_s1 }
   0x6   :  { %p451_p2 = pnand %p449_p1, %p446_p0 }
   0x8   :  { %454 = shalt.err (!%p451_p2)
}
   0x9   :  { %s455_s21 = scalar_lea.vmem %s29_s13, 4096  ;;  %p460_p4 = scmp.lt.s32.totalorder %s29_s13, %s29_s13 }
   0xa   :  { %p456_p3 = scmp.ne.s32.totalorder %s29_s13, %s455_s21  ;;  %p461_p5 = scmp.lt.s32.totalorder %s455_s21, %s455_s21 }
   0xc   :  { %p462_p6 = por %p461_p5, %p460_p4 }
   0xe   :  { %p463_p7 = pnand %p462_p6, %p456_p3 }
  0x10   :  { %466 = shalt.err (!%p463_p7)
}
  0x11   :  { %s540_s22 = smov 256   ;;  %s541_s23 = smov 16  }
  0x12   :  { %34 = dma.hbm_to_vmem [thread:$0]  %s628_s1, 4096, %s29_s13, [#allocation7], %s540_s22, %s540_s22, %s541_s23  }
  0x13   :  { %s542_s26 = smov [#allocation3]   ;;  %s467_s30 = scalar_lea.hbm %s627_s0, 256 }
  0x14   :  { %s16_s27 = sshll.u32 %s542_s26, 4  ;;  %p468_p8 = scmp.ne.s32.totalorder %s627_s0, %s467_s30  ;;  %s17_s27 = int_to_ptr.vmem [resolvable:$true] %s16_s27 }
  0x15   :  { %p471_p9 = scmp.lt.u32.totalorder %s467_s30, %s627_s0 }
  0x17   :  { %p473_p10 = pnand %p471_p9, %p468_p8 }
  0x19   :  { %476 = shalt.err (!%p473_p10)
}
  0x1a   :  { %s477_s8 = scalar_lea.vmem %s17_s27, 256  ;;  %p482_p12 = scmp.lt.s32.totalorder %s17_s27, %s17_s27 }
  0x1b   :  { %p478_p11 = scmp.ne.s32.totalorder %s17_s27, %s477_s8  ;;  %p483_p13 = scmp.lt.s32.totalorder %s477_s8, %s477_s8 }
  0x1d   :  { %p484_p0 = por %p483_p13, %p482_p12 }
  0x1f   :  { %p485_p1 = pnand %p484_p0, %p478_p11 }
  0x21   :  { %488 = shalt.err (!%p485_p1)
}
  0x22   :  { %s543_s1 = smov 128   ;;  %s544_s9 = smov 8  }
  0x23   :  { %22 = dma.hbm_to_vmem [thread:$0]  %s627_s0, 256, %s17_s27, [#allocation4], %s543_s1, %s543_s1, %s544_s9  }
  0x24   :  { %s545_s12 = smov [#allocation8]   ;;  %s489_s16 = scalar_lea.hbm %s629_s2, 2048 }
  0x25   :  { %s40_s13 = sshll.u32 %s545_s12, 4  ;;  %p490_p2 = scmp.ne.s32.totalorder %s629_s2, %s489_s16  ;;  %s41_s13 = int_to_ptr.vmem [resolvable:$true] %s40_s13 }
  0x26   :  { %p493_p3 = scmp.lt.u32.totalorder %s489_s16, %s629_s2 }
  0x28   :  { %p495_p4 = pnand %p493_p3, %p490_p2 }
  0x2a   :  { %498 = shalt.err (!%p495_p4)
}
  0x2b   :  { %s499_s21 = scalar_lea.vmem %s41_s13, 2048  ;;  %p504_p6 = scmp.lt.s32.totalorder %s41_s13, %s41_s13 }
  0x2c   :  { %p500_p5 = scmp.ne.s32.totalorder %s41_s13, %s499_s21  ;;  %p505_p7 = scmp.lt.s32.totalorder %s499_s21, %s499_s21 }
  0x2e   :  { %p506_p8 = por %p505_p7, %p504_p6 }
  0x30   :  { %p507_p9 = pnand %p506_p8, %p500_p5 }
  0x32   :  { %510 = shalt.err (!%p507_p9)
}
  0x33   :  { %46 = dma.hbm_to_vmem [thread:$0]  %s629_s2, 2048, %s41_s13, [#allocation7], %s543_s1, %s543_s1, %s544_s9  }
  0x34   :  { %533 = dma.done.wait [#allocation4], 256  }
  0x35   :  { %534 = vsyncadd [#allocation4], 4294967040 }
  0x36   :  { %535 = dma.done.wait [#allocation7], 6144  }
  0x37   :  { %536 = vsyncadd [#allocation7], 4294961152  ;;  %v546_v0 = vmov 0.0   ;;  %v65_v1 = vld [vmem:[#allocation6 + $0x8] sm:$0xff]  ;;  %v67_v2 = vld [vmem:[#allocation6 + $0x18] sm:$0xff]  ;;  %s547_s2 = smov [#allocation9]  }
  0x38   :  { %160 = vmatprep.mubr.f32.mxu0 %v546_v0  ;;  %v64_v3 = vld [vmem:[#allocation6] sm:$0xff]  ;;  %v368_v4 = vpack.c.bf16 %v67_v2, %v65_v1  ;;  %v66_v5 = vld [vmem:[#allocation6 + $0x10] sm:$0xff]  ;;  %v69_v6 = vld [vmem:[#allocation6 + $0x28] sm:$0xff]  ;;  %s302_s23 = sshll.u32 %s547_s2, 4  ;;  %s303_s23 = int_to_ptr.vmem [resolvable:$true] %s302_s23 }
  0x39   :  { %v71_v7 = vld [vmem:[#allocation6 + $0x38] sm:$0xff]  ;;  %v370_v8 = vpack.c.bf16 %v66_v5, %v64_v3  ;;  %v68_v10 = vld [vmem:[#allocation6 + $0x20] sm:$0xff]  ;;  %v70_v11 = vld [vmem:[#allocation6 + $0x30] sm:$0xff]  ;;  %s511_s24 = scalar_lea.vmem %s303_s23, 256  ;;  %p516_p11 = scmp.lt.s32.totalorder %s303_s23, %s303_s23 }
  0x3a   :  { %v372_v9 = vpack.c.bf16 %v71_v7, %v69_v6  ;;  %v73_v12 = vld [vmem:[#allocation6 + $0x48] sm:$0xff]  ;;  %369 = vmatprep.subr.bf16.mxu0 %v368_v4  ;;  %v75_v13 = vld [vmem:[#allocation6 + $0x58] sm:$0xff]  ;;  %v374_v14 = vpack.c.bf16 %v70_v11, %v68_v10  ;;  %v72_v16 = vld [vmem:[#allocation6 + $0x40] sm:$0xff]  ;;  %p512_p10 = scmp.ne.s32.totalorder %s303_s23, %s511_s24  ;;  %p517_p12 = scmp.lt.s32.totalorder %s511_s24, %s511_s24 }
  0x3b   :  { %371 = vmatpush1.bf16.msra.mxu0 %v370_v8  ;;  %v376_v15 = vpack.c.bf16 %v75_v13, %v73_v12  ;;  %v74_v17 = vld [vmem:[#allocation6 + $0x50] sm:$0xff]  ;;  %v77_v18 = vld [vmem:[#allocation6 + $0x68] sm:$0xff]  ;;  %v79_v19 = vld [vmem:[#allocation6 + $0x78] sm:$0xff] }
  0x3c   :  { %373 = vmatprep.subr.bf16.mxu0 %v372_v9  ;;  %v378_v20 = vpack.c.bf16 %v74_v17, %v72_v16  ;;  %v380_v21 = vpack.c.bf16 %v79_v19, %v77_v18  ;;  %v76_v22 = vld [vmem:[#allocation6 + $0x60] sm:$0xff]  ;;  %v78_v23 = vld [vmem:[#allocation6 + $0x70] sm:$0xff]  ;;  %v81_v24 = vld [vmem:[#allocation6 + $0x88] sm:$0xff]  ;;  %p518_p13 = por %p517_p12, %p516_p11 }
  0x3d   :  { %v83_v25 = vld [vmem:[#allocation6 + $0x98] sm:$0xff]  ;;  %v382_v26 = vpack.c.bf16 %v78_v23, %v76_v22  ;;  %v80_v28 = vld [vmem:[#allocation6 + $0x80] sm:$0xff]  ;;  %v82_v29 = vld [vmem:[#allocation6 + $0x90] sm:$0xff] }
  0x3e   :  { %v384_v27 = vpack.c.bf16 %v83_v25, %v81_v24  ;;  %v85_v30 = vld [vmem:[#allocation6 + $0xa8] sm:$0xff]  ;;  %v87_v31 = vld [vmem:[#allocation6 + $0xb8] sm:$0xff]  ;;  %v386_v32 = vpack.c.bf16 %v82_v29, %v80_v28  ;;  %v84_v34 = vld [vmem:[#allocation6 + $0xa0] sm:$0xff]  ;;  %p519_p0 = pnand %p518_p13, %p512_p10 }
  0x3f   :  { %375 = vmatpush1.bf16.msra.mxu0 %v374_v14  ;;  %v388_v33 = vpack.c.bf16 %v87_v31, %v85_v30  ;;  %v86_v35 = vld [vmem:[#allocation6 + $0xb0] sm:$0xff]  ;;  %v89_v36 = vld [vmem:[#allocation6 + $0xc8] sm:$0xff]  ;;  %v91_v37 = vld [vmem:[#allocation6 + $0xd8] sm:$0xff] }
  0x40   :  { %377 = vmatprep.subr.bf16.mxu0 %v376_v15  ;;  %v390_v38 = vpack.c.bf16 %v86_v35, %v84_v34  ;;  %v392_v39 = vpack.c.bf16 %v91_v37, %v89_v36  ;;  %v88_v40 = vld [vmem:[#allocation6 + $0xc0] sm:$0xff]  ;;  %v90_v41 = vld [vmem:[#allocation6 + $0xd0] sm:$0xff]  ;;  %v93_v42 = vld [vmem:[#allocation6 + $0xe8] sm:$0xff] }
  0x41   :  { %v95_v43 = vld [vmem:[#allocation6 + $0xf8] sm:$0xff]  ;;  %v394_v44 = vpack.c.bf16 %v90_v41, %v88_v40  ;;  %v92_v46 = vld [vmem:[#allocation6 + $0xe0] sm:$0xff]  ;;  %v94_v47 = vld [vmem:[#allocation6 + $0xf0] sm:$0xff] }
  0x42   :  { %v396_v45 = vpack.c.bf16 %v95_v43, %v93_v42  ;;  %v398_v48 = vpack.c.bf16 %v94_v47, %v92_v46  ;;  %v62_v49 = vld [vmem:[#allocation3] sm:$0xff]  ;;  %v63_v50 = vld [vmem:[#allocation3 + $0x8] sm:$0xff]  ;;  %v195_v51 = vld [vmem:[#allocation8] sm:$0xff] }
  0x43   :  { %379 = vmatpush1.bf16.msra.mxu0 %v378_v20  ;;  %v196_v52 = vld [vmem:[#allocation8 + $0x8] sm:$0xff]  ;;  %v197_v54 = vld [vmem:[#allocation8 + $0x10] sm:$0xff]  ;;  %v198_v55 = vld [vmem:[#allocation8 + $0x18] sm:$0xff] }
  0x44   :  { %381 = vmatprep.subr.bf16.mxu0 %v380_v21  ;;  %v400_v53 = vpack.c.bf16 %v196_v52, %v195_v51  ;;  %v404_v56 = vpack.c.bf16 %v198_v55, %v197_v54  ;;  %v199_v57 = vld [vmem:[#allocation8 + $0x20] sm:$0xff]  ;;  %v200_v58 = vld [vmem:[#allocation8 + $0x28] sm:$0xff]  ;;  %v201_v60 = vld [vmem:[#allocation8 + $0x30] sm:$0xff] }
  0x45   :  { %v408_v59 = vpack.c.bf16 %v200_v58, %v199_v57  ;;  %v202_v61 = vld [vmem:[#allocation8 + $0x38] sm:$0xff]  ;;  %v203_v63 = vld [vmem:[#allocation8 + $0x40] sm:$0xff]  ;;  %v205_v2 = vld [vmem:[#allocation8 + $0x50] sm:$0xff] }
  0x46   :  { %401 = vmatprep.subr.bf16.mxu1 %v400_v53  ;;  %v412_v62 = vpack.c.bf16 %v202_v61, %v201_v60  ;;  %v206_v3 = vld [vmem:[#allocation8 + $0x58] sm:$0xff]  ;;  %v207_v5 = vld [vmem:[#allocation8 + $0x60] sm:$0xff]  ;;  %v208_v6 = vld [vmem:[#allocation8 + $0x68] sm:$0xff] }
  0x47   :  { %383 = vmatpush1.bf16.msra.mxu0 %v382_v26  ;;  %403 = vmatpush3.bf16.msra.mxu1 %v400_v53  ;;  %v420_v4 = vpack.c.bf16 %v206_v3, %v205_v2  ;;  %v424_v7 = vpack.c.bf16 %v208_v6, %v207_v5  ;;  %v209_v8 = vld [vmem:[#allocation8 + $0x70] sm:$0xff]  ;;  %v210_v9 = vld [vmem:[#allocation8 + $0x78] sm:$0xff] }
  0x48   :  { %385 = vmatprep.subr.bf16.mxu0 %v384_v27  ;;  %405 = vmatprep.subr.bf16.mxu1 %v404_v56  ;;  %v428_v10 = vpack.c.bf16 %v210_v9, %v209_v8 }
  0x4b   :  { %387 = vmatpush1.bf16.msra.mxu0 %v386_v32  ;;  %407 = vmatpush3.bf16.msra.mxu1 %v404_v56 }
  0x4c   :  { %389 = vmatprep.subr.bf16.mxu0 %v388_v33  ;;  %409 = vmatprep.subr.bf16.mxu1 %v408_v59 }
  0x4f   :  { %391 = vmatpush1.bf16.msra.mxu0 %v390_v38  ;;  %411 = vmatpush3.bf16.msra.mxu1 %v408_v59 }
  0x50   :  { %393 = vmatprep.subr.bf16.mxu0 %v392_v39  ;;  %413 = vmatprep.subr.bf16.mxu1 %v412_v62 }
  0x53   :  { %395 = vmatpush1.bf16.msra.mxu0 %v394_v44  ;;  %415 = vmatpush3.bf16.msra.mxu1 %v412_v62 }
  0x54   :  { %397 = vmatprep.subr.bf16.mxu0 %v396_v45 }
  0x57   :  { %399 = vmatpush1.bf16.msra.mxu0 %v398_v48 }
  0x5a   :  { %161 = vmatmul.mubr.f32.vlgmr.msra.gmra.mrb[0].mxu0 %v62_v49 }
  0x5b   :  { %166 = vmatprep.mubr.f32.mxu0 %v546_v0  ;;  %v204_v0 = vld [vmem:[#allocation8 + $0x48] sm:$0xff] }
  0x5c   :  { %v416_v1 = vpack.c.bf16 %v204_v0, %v203_v63 }
  0x5e   :  { %167 = vmatmul.mubr.f32.gmra.mrb[2].mxu0 %v63_v50  ;;  %417 = vmatprep.subr.bf16.mxu1 %v416_v1 }
  0x5f   :  { %419 = vmatpush3.bf16.msra.mxu1 %v416_v1 }
  0x60   :  { %421 = vmatprep.subr.bf16.mxu1 %v420_v4 }
  0x63   :  { %423 = vmatpush3.bf16.msra.mxu1 %v420_v4 }
  0x64   :  { %425 = vmatprep.subr.bf16.mxu1 %v424_v7 }
  0x67   :  { %427 = vmatpush3.bf16.msra.mxu1 %v424_v7 }
  0x68   :  { %429 = vmatprep.subr.bf16.mxu1 %v428_v10 }
  0x6b   :  { %431 = vmatpush3.bf16.msra.mxu1 %v428_v10 }
 0x12d   :  { %v162_v11 = vpop.f32.mrb[0].mxu0 }
 0x12e   :  { %v175_v12 = vmul.f32 0.044715, %v162_v11  ;;  %v164_v13 = vpop.f32.mrb[1].mxu0  ;;  %v173_v26 = vmul.f32 0.5, %v162_v11 }
 0x130   :  { %v177_v14 = vmul.f32 %v175_v12, %v162_v11 }
 0x131   :  { %v168_v15 = vpop.f32.mrb[2].mxu0 }
 0x132   :  { %v179_v16 = vmul.f32 %v177_v14, %v162_v11  ;;  %v176_v17 = vmul.f32 0.044715, %v168_v15  ;;  %v170_v18 = vpop.f32.mrb[3].mxu0  ;;  %v174_v30 = vmul.f32 0.5, %v168_v15 }
 0x134   :  { %v178_v19 = vmul.f32 %v176_v17, %v168_v15  ;;  %v181_v20 = vadd.f32 %v179_v16, %v162_v11 }
 0x136   :  { %v180_v21 = vmul.f32 %v178_v19, %v168_v15  ;;  %v183_v22 = vmul.f32 0.7978846, %v181_v20 }
 0x138   :  { %v182_v23 = vadd.f32 %v180_v21, %v168_v15  ;;  %441 = vtanh.f32 %v183_v22 }
 0x13a   :  { %v184_v24 = vmul.f32 0.7978846, %v182_v23 }
 0x13c   :  { %443 = vtanh.f32 %v184_v24 }
 0x142   :  { %v442_v25 = vpop.eup %441 }
 0x143   :  { %v187_v27 = vadd.f32 1.0, %v442_v25 }
 0x145   :  { %v189_v28 = vmul.f32 %v187_v27, %v173_v26 }
 0x146   :  { %v444_v29 = vpop.eup %443 }
 0x147   :  { %v188_v31 = vadd.f32 1.0, %v444_v29  ;;  %v191_v32 = vmul.f32 %v189_v28, %v164_v13 }
 0x149   :  { %v190_v33 = vmul.f32 %v188_v31, %v174_v30  ;;  %365 = vmatprep.mubr.f32.mxu1 %v191_v32 }
 0x14b   :  { %v192_v34 = vmul.f32 %v190_v33, %v170_v18 }
 0x14d   :  { %366 = vmatmul.mubr.f32.vlgmr.msra.gmra.mrb[0].mxu1 %v192_v34 }
 0x220   :  { %v367_v35 = vpop.f32.mrb[0].mxu1 }
 0x221   :  { %296 = vst [vmem:[#allocation9 + $0x8] sm:$0xff] %v367_v35  ;;  %v277_v36 = vpop.f32.mrb[1].mxu1 }
 0x222   :  { %295 = vst [vmem:[#allocation9] sm:$0xff] %v277_v36 }
 0x223   :  { %522 = shalt.err (!%p519_p0)
}
 0x224   :  { %s523_s27 = scalar_lea.hbm %s630_s3, 256 }
 0x225   :  { %p524_p1 = scmp.ne.s32.totalorder %s630_s3, %s523_s27  ;;  %p527_p2 = scmp.lt.u32.totalorder %s523_s27, %s630_s3 }
 0x227   :  { %p529_p3 = pnand %p527_p2, %p524_p1 }
 0x229   :  { %532 = shalt.err (!%p529_p3)
}
 0x22a   :  { %308 = dma.vmem_to_hbm [thread:$0]  %s303_s23, 256, %s630_s3, [#allocation5], %s543_s1, %s543_s1, %s544_s9  }
 0x22b   :  { %537 = dma.done.wait [#allocation5], 256  }
 0x22c   :  { %538 = vsyncadd [#allocation5], 4294967040 }
 0x22d   :  { %312 = vsyncpa [#allocation4], 1 }
 0x22e   :  { %313 = vsyncpa [#allocation7], 1 }
 0x22f   :  { %314 = vsyncpa [#allocation5], 1 }

</bundles_post_ra>
